<compile_context>
chip_gen: v7x
topology: tpu7x:2x2x1
jax: 0.10.0
libtpu: 0.0.40
codegen_flags: <defaults>
</compile_context>

<pallas_src>
import functools

import jax
import jax.numpy as jnp
from jax.experimental import pallas as pl
from jax.experimental.pallas import tpu as pltpu

EPS = 1e-5
LANE = 128
SUBLANE = 8
VMEM_LIMIT_BYTES = 48 * 1024 * 1024           # safe scoped-VMEM budget on v5e/v6e/v7x
FUSED_WORKING_SET_BUDGET = 24 * 1024 * 1024   # fuse only when everything fits comfortably


# --------------------------------------------------------------------------- fused kernel
def _fused_kernel(x_ref, w1_ref, w2_ref, w3_ref,
                  g1_ref, be1_ref, g2_ref, be2_ref, b3_ref, o_ref,
                  *, inv_batch):
    """Whole network in one kernel: (Linear -> BN(batch stats) -> ReLU) x2 -> Linear+b."""

    def bn_relu(h, gamma, beta):
        # Exact two-pass (centered) variance: no E[h^2]-mean^2 cancellation.
        mean = jnp.sum(h, axis=0, keepdims=True) * inv_batch
        c = h - mean
        var = jnp.sum(c * c, axis=0, keepdims=True) * inv_batch
        scale = gamma * jax.lax.rsqrt(var + EPS)      # padded lanes: gamma=0 -> stays 0
        return jnp.maximum(c * scale + beta, 0.0)

    h1 = jnp.dot(x_ref[...].astype(w1_ref.dtype), w1_ref[...],
                 preferred_element_type=jnp.float32)
    a1 = bn_relu(h1, g1_ref[...], be1_ref[...])
    h2 = jnp.dot(a1.astype(w2_ref.dtype), w2_ref[...],
                 preferred_element_type=jnp.float32)
    a2 = bn_relu(h2, g2_ref[...], be2_ref[...])
    out = jnp.dot(a2.astype(w3_ref.dtype), w3_ref[...],
                  preferred_element_type=jnp.float32) + b3_ref[...]
    o_ref[...] = out.astype(o_ref.dtype)


# --------------------------------------------------------------------------- tiled kernels
def _packed_stats(h):
    """(8, H) stats block: row 0 = sum over batch tile, row 1 = sum of squares."""
    s = jnp.sum(h, axis=0, keepdims=True)
    sq = jnp.sum(h * h, axis=0, keepdims=True)
    pad = jnp.zeros((SUBLANE - 2, h.shape[1]), jnp.float32)
    return jnp.concatenate([s, sq, pad], axis=0)


def _fold_stats(stats, gamma, beta, *, nt, inv_batch):
    """Reduce per-tile packed stats and fold BN into per-feature scale/shift (in-kernel)."""
    total = stats[0:SUBLANE, :]
    for i in range(1, nt):                       # nt is a static Python int
        total = total + stats[i * SUBLANE:(i + 1) * SUBLANE, :]
    mean = total[0:1, :] * inv_batch
    ex2 = total[1:2, :] * inv_batch
    # One-pass variance; clamp guards cancellation.  (Fused path uses exact two-pass.)
    var = jnp.maximum(ex2 - mean * mean, 0.0)
    scale = gamma * jax.lax.rsqrt(var + EPS)
    shift = beta - mean * scale
    return scale, shift


def _linear_stats_kernel(x_ref, w_ref, h_ref, stats_ref):
    """h = x @ w (bias cancels under BN); emit packed per-tile sum/sumsq of f32 h."""
    h = jnp.dot(x_ref[...].astype(w_ref.dtype), w_ref[...],
                preferred_element_type=jnp.float32)
    h_ref[...] = h.astype(h_ref.dtype)           # bf16 downcast only for the HBM write
    stats_ref[...] = _packed_stats(h)


def _bn_relu_linear_stats_kernel(h_ref, stats_in_ref, g_ref, be_ref, w_ref,
                                 h2_ref, stats_out_ref, *, nt, inv_batch):
    """In-kernel BN fold -> a = relu(h*scale + shift) -> h2 = a @ w (+ packed stats)."""
    scale, shift = _fold_stats(stats_in_ref[...], g_ref[...], be_ref[...],
                               nt=nt, inv_batch=inv_batch)
    a = jnp.maximum(h_ref[...] * scale + shift, 0.0)
    h2 = jnp.dot(a.astype(w_ref.dtype), w_ref[...],
                 preferred_element_type=jnp.float32)
    h2_ref[...] = h2.astype(h2_ref.dtype)
    stats_out_ref[...] = _packed_stats(h2)


def _bn_relu_linear_bias_kernel(h_ref, stats_in_ref, g_ref, be_ref, w_ref, b_ref,
                                o_ref, *, nt, inv_batch):
    """In-kernel BN fold -> a = relu(h*scale + shift) -> out = a @ w + b."""
    scale, shift = _fold_stats(stats_in_ref[...], g_ref[...], be_ref[...],
                               nt=nt, inv_batch=inv_batch)
    a = jnp.maximum(h_ref[...] * scale + shift, 0.0)
    out = jnp.dot(a.astype(w_ref.dtype), w_ref[...],
                  preferred_element_type=jnp.float32) + b_ref[...]
    o_ref[...] = out.astype(o_ref.dtype)


# --------------------------------------------------------------------------- helpers
def _pad_to(n, m):
    return ((n + m - 1) // m) * m


def _pad2(a, rows, cols):
    r, c = a.shape
    return jnp.pad(a, ((0, rows - r), (0, cols - c)))


# --------------------------------------------------------------------------- wrapper
def batch_net_forward(x, params, *, b_tile=None, force_tiled=False,
                      interm_dtype=jnp.bfloat16, mxu_dtype=None):
    (w1, b1, g1, be1, w2, b2, g2, be2, w3, b3) = params
    del b1, b2  # exact no-ops under training-mode BatchNorm (mean subtraction removes them)

    B, in_dim = x.shape
    h1_dim, h2_dim, out_dim = w1.shape[1], w2.shape[1], w3.shape[1]

    in_p = _pad_to(in_dim, LANE)
    h1_p = _pad_to(h1_dim, LANE)
    h2_p = _pad_to(h2_dim, LANE)
    out_p = _pad_to(out_dim, LANE)

    # Lane-pad once in the wrapper -> lane-dense vregs, full 128-wide MXU tiles, unmasked
    # vector stores.  NOTE: gamma/beta are ZERO-padded so padded lanes fold to
    # scale = shift = 0 and stay exactly 0 through ReLU (do not pad gamma with ones).
    x_p = _pad2(x, B, in_p)
    w1_p = _pad2(w1, in_p, h1_p)
    w2_p = _pad2(w2, h1_p, h2_p)
    w3_p = _pad2(w3, h2_p, out_p)
    b3_p = _pad2(b3, 1, out_p)
    g1_p, be1_p = _pad2(g1, 1, h1_p), _pad2(be1, 1, h1_p)
    g2_p, be2_p = _pad2(g2, 1, h2_p), _pad2(be2, 1, h2_p)

    if mxu_dtype is not None:
        # bf16 weights -> full-rate MXU on v6e/v7x; activations are cast at the dot
        # boundary inside the kernels (astype(w_ref.dtype)); accumulation stays f32.
        w1_p, w2_p, w3_p = (w.astype(mxu_dtype) for w in (w1_p, w2_p, w3_p))

    f32 = jnp.float32
    inv_batch = 1.0 / float(B)

    # Fused working set: params + padded x + f32 activations kept live in VMEM.
    fused_bytes = 4 * (B * (in_p + 2 * h1_p + 2 * h2_p + out_p)
                       + in_p * h1_p + h1_p * h2_p + h2_p * out_p
                       + 2 * h1_p + 2 * h2_p + out_p)

    if (not force_tiled) and fused_bytes <= FUSED_WORKING_SET_BUDGET:
        # ---- Single fused pallas_call: whole batch + all weights resident in VMEM ----
        out_padded = pl.pallas_call(
            functools.partial(_fused_kernel, inv_batch=inv_batch),
            out_shape=jax.ShapeDtypeStruct((B, out_p), f32),
            compiler_params=pltpu.CompilerParams(
                vmem_limit_bytes=VMEM_LIMIT_BYTES),
        )(x_p, w1_p, w2_p, w3_p, g1_p, be1_p, g2_p, be2_p, b3_p)
        return out_padded[:, :out_dim]

    # ---- Tiled 3-call path for large B ------------------------------------------------
    if b_tile is None:
        for t in (512, 256, 128, 64, 32, 16, 8):
            if B % t == 0 and B // t >= 2:   # nt >= 2 so v7x's 2 TensorCores both get work
                b_tile = t
                break
        else:
            b_tile = B if B % SUBLANE == 0 else None
    assert b_tile is not None and B % b_tile == 0 and b_tile % SUBLANE == 0, \
        "tiled path requires B divisible by an 8-aligned batch tile"
    nt = B // b_tile

    cp = pltpu.CompilerParams(
        dimension_semantics=("parallel",),     # batch tiles shard across v7x's 2 TCs
        vmem_limit_bytes=VMEM_LIMIT_BYTES,
    )
    # TODO(synk): for very large hidden dims, add an output-feature (N) grid axis and
    # pipeline_mode=pl.Buffered(1) on the grid-invariant weight specs so tile choices
    # sized for v5e/v6e's 128 MiB VMEM do not overflow v7x's 64 MiB.

    def row_spec(cols):
        return pl.BlockSpec((b_tile, cols), lambda i: (i, 0))

    def full_spec(rows, cols):
        return pl.BlockSpec((rows, cols), lambda i: (0, 0))    # VMEM-resident across grid

    def stats_spec(cols):
        return pl.BlockSpec((SUBLANE, cols), lambda i: (i, 0))

    def stats_shape(cols):
        return jax.ShapeDtypeStruct((nt * SUBLANE, cols), f32)

    # ---- Layer 1: Linear (+ packed per-tile batch-stat partials) ----------------------
    h1, st1 = pl.pallas_call(
        _linear_stats_kernel,
        grid=(nt,),
        in_specs=[row_spec(in_p), full_spec(in_p, h1_p)],
        out_specs=(row_spec(h1_p), stats_spec(h1_p)),
        out_shape=(jax.ShapeDtypeStruct((B, h1_p), interm_dtype), stats_shape(h1_p)),
        compiler_params=cp,
    )(x_p, w1_p)

    # ---- Layer 2: in-kernel BN fold -> BN+ReLU -> Linear (+ packed stats) -------------
    h2, st2 = pl.pallas_call(
        functools.partial(_bn_relu_linear_stats_kernel, nt=nt, inv_batch=inv_batch),
        grid=(nt,),
        in_specs=[row_spec(h1_p), full_spec(nt * SUBLANE, h1_p),
                  full_spec(1, h1_p), full_spec(1, h1_p), full_spec(h1_p, h2_p)],
        out_specs=(row_spec(h2_p), stats_spec(h2_p)),
        out_shape=(jax.ShapeDtypeStruct((B, h2_p), interm_dtype), stats_shape(h2_p)),
        compiler_params=cp,
    )(h1, st1, g1_p, be1_p, w2_p)

    # ---- Layer 3: in-kernel BN fold -> BN+ReLU -> Linear + bias -----------------------
    out_padded = pl.pallas_call(
        functools.partial(_bn_relu_linear_bias_kernel, nt=nt, inv_batch=inv_batch),
        grid=(nt,),
        in_specs=[row_spec(h2_p), full_spec(nt * SUBLANE, h2_p),
                  full_spec(1, h2_p), full_spec(1, h2_p),
                  full_spec(h2_p, out_p), full_spec(1, out_p)],
        out_specs=row_spec(out_p),
        out_shape=jax.ShapeDtypeStruct((B, out_p), f32),
        compiler_params=cp,
    )(h2, st2, g2_p, be2_p, w3_p, b3_p)

    return out_padded[:, :out_dim]


# --------------------------------------------------------------------------- params / reference
def init_params(key, in_dim, n_hidden_1, n_hidden_2, out_dim):
    """nn.Linear-style init (uniform +/- 1/sqrt(fan_in)); BN gamma=1, beta=0.
    Weights stored pre-transposed as (in_features, out_features)."""
    def linear(k, fan_in, fan_out):
        kw, kb = jax.random.split(k)
        bound = 1.0 / jnp.sqrt(jnp.float32(fan_in))
        w = jax.random.uniform(kw, (fan_in, fan_out), jnp.float32, -bound, bound)
        b = jax.random.uniform(kb, (1, fan_out), jnp.float32, -bound, bound)
        return w, b

    k1, k2, k3 = jax.random.split(key, 3)
    w1, b1 = linear(k1, in_dim, n_hidden_1)
    w2, b2 = linear(k2, n_hidden_1, n_hidden_2)
    w3, b3 = linear(k3, n_hidden_2, out_dim)
    g1 = jnp.ones((1, n_hidden_1), jnp.float32)
    be1 = jnp.zeros((1, n_hidden_1), jnp.float32)
    g2 = jnp.ones((1, n_hidden_2), jnp.float32)
    be2 = jnp.zeros((1, n_hidden_2), jnp.float32)
    return (w1, b1, g1, be1, w2, b2, g2, be2, w3, b3)


def batch_net_ref(x, params):
    """Faithful PyTorch-semantics reference: Linear WITH bias, two-pass batch-stats BN."""
    (w1, b1, g1, be1, w2, b2, g2, be2, w3, b3) = params

    def lin_bn_relu(h, w, b, g, be):
        h = h @ w + b
        mean = jnp.mean(h, axis=0, keepdims=True)
        var = jnp.mean((h - mean) ** 2, axis=0, keepdims=True)
        return jnp.maximum((h - mean) / jnp.sqrt(var + EPS) * g + be, 0.0)

    h = lin_bn_relu(x, w1, b1, g1, be1)
    h = lin_bn_relu(h, w2, b2, g2, be2)
    return h @ w3 + b3


# TODO(synk): nn.BatchNorm1d's running_mean/running_var buffer updates (training-time
# momentum tracking) are not materialized; only the forward math (batch stats) is emitted.

if __name__ == "__main__":
    key = jax.random.PRNGKey(0)
    kx, kp, kx2, kp2 = jax.random.split(key, 4)

    fwd = jax.jit(batch_net_forward,
                  static_argnames=("b_tile", "force_tiled", "interm_dtype", "mxu_dtype"))

    # ---- Small shapes: exercises the fused single-kernel (VMEM-resident) path --------
    batch, in_dim, n_hidden_1, n_hidden_2, out_dim = 64, 16, 32, 32, 8
    x = jax.random.normal(kx, (batch, in_dim), jnp.float32)
    params = init_params(kp, in_dim, n_hidden_1, n_hidden_2, out_dim)

    out = jax.block_until_ready(fwd(x, params))
    ref = batch_net_ref(x, params)
    assert out.shape == (batch, out_dim)
    assert jnp.allclose(out, ref, atol=5e-4, rtol=5e-4), float(jnp.max(jnp.abs(out - ref)))

    # ---- Larger batch: exercises the tiled (3-call, bf16-intermediate) path ----------
    B2, d_in2, h1_2, h2_2, d_out2 = 512, 48, 96, 80, 24
    x2 = jax.random.normal(kx2, (B2, d_in2), jnp.float32)
    params2 = init_params(kp2, d_in2, h1_2, h2_2, d_out2)
    out2 = jax.block_until_ready(fwd(x2, params2, force_tiled=True))
    ref2 = batch_net_ref(x2, params2)
    assert out2.shape == (B2, d_out2)
    # bf16 inter-layer activations + one-pass variance -> looser tolerance on this path.
    assert jnp.allclose(out2, ref2, atol=3e-2, rtol=3e-2), \
        float(jnp.max(jnp.abs(out2 - ref2)))

    print("KERNEL_OK")
</pallas_src>

<mosaic_0001>
module attributes {stable_mosaic.version = 11 : i64} {
  func.func @_fused_kernel(%arg0: memref<64x128xf32, #tpu.memory_space<vmem>>, %arg1: memref<128x128xf32, #tpu.memory_space<vmem>>, %arg2: memref<128x128xf32, #tpu.memory_space<vmem>>, %arg3: memref<128x128xf32, #tpu.memory_space<vmem>>, %arg4: memref<1x128xf32, #tpu.memory_space<vmem>>, %arg5: memref<1x128xf32, #tpu.memory_space<vmem>>, %arg6: memref<1x128xf32, #tpu.memory_space<vmem>>, %arg7: memref<1x128xf32, #tpu.memory_space<vmem>>, %arg8: memref<1x128xf32, #tpu.memory_space<vmem>>, %arg9: memref<64x128xf32, #tpu.memory_space<vmem>>) attributes {dimension_semantics = [], scalar_prefetch = 0 : i64, scratch_operands = 0 : i64, tpu.core_type = #tpu.core_type<tc>} {
    %c0 = arith.constant 0 : index
    %c0_0 = arith.constant 0 : index
    %0 = vector.load %arg0[%c0, %c0_0] : memref<64x128xf32, #tpu.memory_space<vmem>>, vector<64x128xf32>
    %c0_1 = arith.constant 0 : index
    %c0_2 = arith.constant 0 : index
    %1 = vector.load %arg1[%c0_1, %c0_2] : memref<128x128xf32, #tpu.memory_space<vmem>>, vector<128x128xf32>
    %cst = arith.constant dense<0.000000e+00> : vector<64x128xf32>
    %2 = tpu.matmul %0, %1, %cst {dimension_numbers = #tpu.dot_dimension_numbers<[1], [0], [0], [1], [0, 0, 1, 1], [], []>} : vector<64x128xf32>, vector<128x128xf32>, vector<64x128xf32> -> vector<64x128xf32>
    %c0_3 = arith.constant 0 : index
    %c0_4 = arith.constant 0 : index
    %3 = vector.load %arg4[%c0_3, %c0_4] : memref<1x128xf32, #tpu.memory_space<vmem>>, vector<1x128xf32>
    %c0_5 = arith.constant 0 : index
    %c0_6 = arith.constant 0 : index
    %4 = vector.load %arg5[%c0_5, %c0_6] : memref<1x128xf32, #tpu.memory_space<vmem>>, vector<1x128xf32>
    %cst_7 = arith.constant dense<0.000000e+00> : vector<128xf32>
    %5 = vector.multi_reduction <add>, %2, %cst_7 [0] : vector<64x128xf32> to vector<128xf32>
    %6 = vector.shape_cast %5 : vector<128xf32> to vector<1x128xf32>
    %cst_8 = arith.constant 1.562500e-02 : f32
    %7 = vector.broadcast %cst_8 : f32 to vector<1x128xf32>
    %8 = arith.mulf %6, %7 : vector<1x128xf32>
    %9 = vector.broadcast %8 : vector<1x128xf32> to vector<64x128xf32>
    %10 = arith.subf %2, %9 : vector<64x128xf32>
    %11 = arith.mulf %10, %10 : vector<64x128xf32>
    %cst_9 = arith.constant dense<0.000000e+00> : vector<128xf32>
    %12 = vector.multi_reduction <add>, %11, %cst_9 [0] : vector<64x128xf32> to vector<128xf32>
    %13 = vector.shape_cast %12 : vector<128xf32> to vector<1x128xf32>
    %cst_10 = arith.constant 1.562500e-02 : f32
    %14 = vector.broadcast %cst_10 : f32 to vector<1x128xf32>
    %15 = arith.mulf %13, %14 : vector<1x128xf32>
    %cst_11 = arith.constant 9.99999974E-6 : f32
    %16 = vector.broadcast %cst_11 : f32 to vector<1x128xf32>
    %17 = arith.addf %15, %16 : vector<1x128xf32>
    %18 = math.rsqrt %17 : vector<1x128xf32>
    %19 = arith.mulf %3, %18 : vector<1x128xf32>
    %20 = vector.broadcast %19 : vector<1x128xf32> to vector<64x128xf32>
    %21 = arith.mulf %10, %20 : vector<64x128xf32>
    %22 = vector.broadcast %4 : vector<1x128xf32> to vector<64x128xf32>
    %23 = arith.addf %21, %22 : vector<64x128xf32>
    %cst_12 = arith.constant 0.000000e+00 : f32
    %24 = vector.broadcast %cst_12 : f32 to vector<64x128xf32>
    %25 = arith.maximumf %23, %24 : vector<64x128xf32>
    %c0_13 = arith.constant 0 : index
    %c0_14 = arith.constant 0 : index
    %26 = vector.load %arg2[%c0_13, %c0_14] : memref<128x128xf32, #tpu.memory_space<vmem>>, vector<128x128xf32>
    %cst_15 = arith.constant dense<0.000000e+00> : vector<64x128xf32>
    %27 = tpu.matmul %25, %26, %cst_15 {dimension_numbers = #tpu.dot_dimension_numbers<[1], [0], [0], [1], [0, 0, 1, 1], [], []>} : vector<64x128xf32>, vector<128x128xf32>, vector<64x128xf32> -> vector<64x128xf32>
    %c0_16 = arith.constant 0 : index
    %c0_17 = arith.constant 0 : index
    %28 = vector.load %arg6[%c0_16, %c0_17] : memref<1x128xf32, #tpu.memory_space<vmem>>, vector<1x128xf32>
    %c0_18 = arith.constant 0 : index
    %c0_19 = arith.constant 0 : index
    %29 = vector.load %arg7[%c0_18, %c0_19] : memref<1x128xf32, #tpu.memory_space<vmem>>, vector<1x128xf32>
    %cst_20 = arith.constant dense<0.000000e+00> : vector<128xf32>
    %30 = vector.multi_reduction <add>, %27, %cst_20 [0] : vector<64x128xf32> to vector<128xf32>
    %31 = vector.shape_cast %30 : vector<128xf32> to vector<1x128xf32>
    %cst_21 = arith.constant 1.562500e-02 : f32
    %32 = vector.broadcast %cst_21 : f32 to vector<1x128xf32>
    %33 = arith.mulf %31, %32 : vector<1x128xf32>
    %34 = vector.broadcast %33 : vector<1x128xf32> to vector<64x128xf32>
    %35 = arith.subf %27, %34 : vector<64x128xf32>
    %36 = arith.mulf %35, %35 : vector<64x128xf32>
    %cst_22 = arith.constant dense<0.000000e+00> : vector<128xf32>
    %37 = vector.multi_reduction <add>, %36, %cst_22 [0] : vector<64x128xf32> to vector<128xf32>
    %38 = vector.shape_cast %37 : vector<128xf32> to vector<1x128xf32>
    %cst_23 = arith.constant 1.562500e-02 : f32
    %39 = vector.broadcast %cst_23 : f32 to vector<1x128xf32>
    %40 = arith.mulf %38, %39 : vector<1x128xf32>
    %cst_24 = arith.constant 9.99999974E-6 : f32
    %41 = vector.broadcast %cst_24 : f32 to vector<1x128xf32>
    %42 = arith.addf %40, %41 : vector<1x128xf32>
    %43 = math.rsqrt %42 : vector<1x128xf32>
    %44 = arith.mulf %28, %43 : vector<1x128xf32>
    %45 = vector.broadcast %44 : vector<1x128xf32> to vector<64x128xf32>
    %46 = arith.mulf %35, %45 : vector<64x128xf32>
    %47 = vector.broadcast %29 : vector<1x128xf32> to vector<64x128xf32>
    %48 = arith.addf %46, %47 : vector<64x128xf32>
    %cst_25 = arith.constant 0.000000e+00 : f32
    %49 = vector.broadcast %cst_25 : f32 to vector<64x128xf32>
    %50 = arith.maximumf %48, %49 : vector<64x128xf32>
    %c0_26 = arith.constant 0 : index
    %c0_27 = arith.constant 0 : index
    %51 = vector.load %arg3[%c0_26, %c0_27] : memref<128x128xf32, #tpu.memory_space<vmem>>, vector<128x128xf32>
    %cst_28 = arith.constant dense<0.000000e+00> : vector<64x128xf32>
    %52 = tpu.matmul %50, %51, %cst_28 {dimension_numbers = #tpu.dot_dimension_numbers<[1], [0], [0], [1], [0, 0, 1, 1], [], []>} : vector<64x128xf32>, vector<128x128xf32>, vector<64x128xf32> -> vector<64x128xf32>
    %c0_29 = arith.constant 0 : index
    %c0_30 = arith.constant 0 : index
    %53 = vector.load %arg8[%c0_29, %c0_30] : memref<1x128xf32, #tpu.memory_space<vmem>>, vector<1x128xf32>
    %54 = vector.broadcast %53 : vector<1x128xf32> to vector<64x128xf32>
    %55 = arith.addf %52, %54 : vector<64x128xf32>
    %c0_31 = arith.constant 0 : index
    %c0_32 = arith.constant 0 : index
    %56 = vector.load %arg9[%c0_31, %c0_32] : memref<64x128xf32, #tpu.memory_space<vmem>>, vector<64x128xf32>
    tpu.vector_store %arg9[%c0_31, %c0_32], %55 {strides = array<i32>} : memref<64x128xf32, #tpu.memory_space<vmem>>, vector<64x128xf32>,
    return
  }
}

</mosaic_0001>

<bundles_post_ra>
// kernel: batch_net_forward.1
= control target key start
LH: loop header
LB: loop body
LE: loop exit
PB: predicated region body
PF: predicated region fallthrough
CT: control target
= control target key end

     0   :  { %s1179_s1 = inlined_call_operand.vmem [shape: f32[128,128], index: 1, kind: input, shape index: {}]   ;;  %s1180_s0 = inlined_call_operand.vmem [shape: f32[64,128], index: 0, kind: input, shape index: {}]   ;;  %s1181_s2 = inlined_call_operand.vmem [shape: f32[128,128], index: 2, kind: input, shape index: {}]   ;;  %s1182_s4 = inlined_call_operand.vmem [shape: f32[1,128], index: 4, kind: input, shape index: {}]   ;;  %s1183_s5 = inlined_call_operand.vmem [shape: f32[1,128], index: 5, kind: input, shape index: {}]   ;;  %s1184_s3 = inlined_call_operand.vmem [shape: f32[128,128], index: 3, kind: input, shape index: {}]   ;;  %s1185_s6 = inlined_call_operand.vmem [shape: f32[1,128], index: 6, kind: input, shape index: {}]   ;;  %s1186_s7 = inlined_call_operand.vmem [shape: f32[1,128], index: 7, kind: input, shape index: {}]   ;;  %s1187_s8 = inlined_call_operand.vmem [shape: f32[1,128], index: 8, kind: input, shape index: {}]   ;;  %s1188_s9 = inlined_call_operand.vmem [shape: f32[64,128], index: 9, kind: output, shape index: {}]  }
   0x1   :  { %v40_v0 = vld [vmem:[%s1179_s1] sm:$0xff]  ;;  %v41_v1 = vld [vmem:[%s1179_s1 + $0x8] sm:$0xff]  ;;  %v42_v2 = vld [vmem:[%s1179_s1 + $0x10] sm:$0xff] }
   0x2   :  { %v799_v3 = vpack.c.bf16 %v41_v1, %v40_v0  ;;  %v43_v4 = vld [vmem:[%s1179_s1 + $0x18] sm:$0xff]  ;;  %v44_v6 = vld [vmem:[%s1179_s1 + $0x20] sm:$0xff]  ;;  %v45_v7 = vld [vmem:[%s1179_s1 + $0x28] sm:$0xff] }
   0x3   :  { %v803_v5 = vpack.c.bf16 %v43_v4, %v42_v2  ;;  %v807_v8 = vpack.c.bf16 %v45_v7, %v44_v6  ;;  %v32_v9 = vld [vmem:[%s1180_s0] sm:$0xff]  ;;  %v46_v10 = vld [vmem:[%s1179_s1 + $0x30] sm:$0xff]  ;;  %v47_v11 = vld [vmem:[%s1179_s1 + $0x38] sm:$0xff] }
   0x4   :  { %800 = vmatprep.subr.bf16.mxu0 %v799_v3  ;;  %699 = vmatprep.mubr.f32.mxu0 %v32_v9  ;;  %v811_v12 = vpack.c.bf16 %v47_v11, %v46_v10  ;;  %v48_v13 = vld [vmem:[%s1179_s1 + $0x40] sm:$0xff]  ;;  %v49_v14 = vld [vmem:[%s1179_s1 + $0x48] sm:$0xff]  ;;  %v50_v16 = vld [vmem:[%s1179_s1 + $0x50] sm:$0xff] }
   0x5   :  { %802 = vmatpush3.bf16.msra.mxu0 %v799_v3  ;;  %v815_v15 = vpack.c.bf16 %v49_v14, %v48_v13  ;;  %v51_v17 = vld [vmem:[%s1179_s1 + $0x58] sm:$0xff]  ;;  %v52_v19 = vld [vmem:[%s1179_s1 + $0x60] sm:$0xff]  ;;  %v53_v20 = vld [vmem:[%s1179_s1 + $0x68] sm:$0xff] }
   0x6   :  { %804 = vmatprep.subr.bf16.mxu0 %v803_v5  ;;  %v819_v18 = vpack.c.bf16 %v51_v17, %v50_v16  ;;  %v823_v21 = vpack.c.bf16 %v53_v20, %v52_v19  ;;  %v54_v22 = vld [vmem:[%s1179_s1 + $0x70] sm:$0xff]  ;;  %v55_v23 = vld [vmem:[%s1179_s1 + $0x78] sm:$0xff]  ;;  %v33_v25 = vld [vmem:[%s1180_s0 + $0x8] sm:$0xff] }
   0x7   :  { %v827_v24 = vpack.c.bf16 %v55_v23, %v54_v22  ;;  %v34_v26 = vld [vmem:[%s1180_s0 + $0x10] sm:$0xff]  ;;  %v35_v27 = vld [vmem:[%s1180_s0 + $0x18] sm:$0xff]  ;;  %v36_v28 = vld [vmem:[%s1180_s0 + $0x20] sm:$0xff] }
   0x8   :  { %v37_v29 = vld [vmem:[%s1180_s0 + $0x28] sm:$0xff]  ;;  %v38_v30 = vld [vmem:[%s1180_s0 + $0x30] sm:$0xff]  ;;  %v39_v31 = vld [vmem:[%s1180_s0 + $0x38] sm:$0xff] }
   0x9   :  { %806 = vmatpush3.bf16.msra.mxu0 %v803_v5  ;;  %v246_v32 = vld [vmem:[%s1181_s2] sm:$0xff]  ;;  %v247_v33 = vld [vmem:[%s1181_s2 + $0x8] sm:$0xff]  ;;  %v248_v35 = vld [vmem:[%s1181_s2 + $0x10] sm:$0xff] }
   0xa   :  { %808 = vmatprep.subr.bf16.mxu0 %v807_v8  ;;  %v831_v34 = vpack.c.bf16 %v247_v33, %v246_v32  ;;  %v249_v36 = vld [vmem:[%s1181_s2 + $0x18] sm:$0xff]  ;;  %v250_v38 = vld [vmem:[%s1181_s2 + $0x20] sm:$0xff]  ;;  %v251_v39 = vld [vmem:[%s1181_s2 + $0x28] sm:$0xff] }
   0xb   :  { %v835_v37 = vpack.c.bf16 %v249_v36, %v248_v35  ;;  %v839_v40 = vpack.c.bf16 %v251_v39, %v250_v38  ;;  %v252_v41 = vld [vmem:[%s1181_s2 + $0x30] sm:$0xff]  ;;  %v253_v42 = vld [vmem:[%s1181_s2 + $0x38] sm:$0xff]  ;;  %v254_v44 = vld [vmem:[%s1181_s2 + $0x40] sm:$0xff] }
   0xc   :  { %832 = vmatprep.subr.bf16.mxu1 %v831_v34  ;;  %v843_v43 = vpack.c.bf16 %v253_v42, %v252_v41  ;;  %v255_v45 = vld [vmem:[%s1181_s2 + $0x48] sm:$0xff]  ;;  %v256_v47 = vld [vmem:[%s1181_s2 + $0x50] sm:$0xff]  ;;  %v257_v48 = vld [vmem:[%s1181_s2 + $0x58] sm:$0xff] }
   0xd   :  { %810 = vmatpush3.bf16.msra.mxu0 %v807_v8  ;;  %834 = vmatpush3.bf16.msra.mxu1 %v831_v34  ;;  %v847_v46 = vpack.c.bf16 %v255_v45, %v254_v44  ;;  %v851_v49 = vpack.c.bf16 %v257_v48, %v256_v47  ;;  %v258_v50 = vld [vmem:[%s1181_s2 + $0x60] sm:$0xff]  ;;  %v259_v51 = vld [vmem:[%s1181_s2 + $0x68] sm:$0xff]  ;;  %v260_v53 = vld [vmem:[%s1181_s2 + $0x70] sm:$0xff]  ;;  %v211_v45 = vlaneseq }
   0xe   :  { %812 = vmatprep.subr.bf16.mxu0 %v811_v12  ;;  %836 = vmatprep.subr.bf16.mxu1 %v835_v37  ;;  %v855_v52 = vpack.c.bf16 %v259_v51, %v258_v50  ;;  %v261_v54 = vld [vmem:[%s1181_s2 + $0x78] sm:$0xff]  ;;  %v161_v47 = vld [vmem:[%s1182_s4] sm:$0x1] }
   0xf   :  { %v859_v55 = vpack.c.bf16 %v261_v54, %v260_v53 }
  0x11   :  { %814 = vmatpush3.bf16.msra.mxu0 %v811_v12  ;;  %838 = vmatpush3.bf16.msra.mxu1 %v835_v37 }
  0x12   :  { %816 = vmatprep.subr.bf16.mxu0 %v815_v15  ;;  %840 = vmatprep.subr.bf16.mxu1 %v839_v40 }
  0x15   :  { %818 = vmatpush3.bf16.msra.mxu0 %v815_v15  ;;  %842 = vmatpush3.bf16.msra.mxu1 %v839_v40 }
  0x16   :  { %820 = vmatprep.subr.bf16.mxu0 %v819_v18  ;;  %844 = vmatprep.subr.bf16.mxu1 %v843_v43 }
  0x19   :  { %822 = vmatpush3.bf16.msra.mxu0 %v819_v18  ;;  %846 = vmatpush3.bf16.msra.mxu1 %v843_v43 }
  0x1a   :  { %824 = vmatprep.subr.bf16.mxu0 %v823_v21  ;;  %848 = vmatprep.subr.bf16.mxu1 %v847_v46 }
  0x1d   :  { %826 = vmatpush3.bf16.msra.mxu0 %v823_v21  ;;  %850 = vmatpush3.bf16.msra.mxu1 %v847_v46  ;;  %v1085_v46 = vshrl.u32 %v211_v45, 7 }
  0x1e   :  { %828 = vmatprep.subr.bf16.mxu0 %v827_v24  ;;  %852 = vmatprep.subr.bf16.mxu1 %v851_v49 }
  0x1f   :  { %v213_v48 = vsub.s32 0, %v1085_v46 }
  0x21   :  { %830 = vmatpush3.bf16.msra.mxu0 %v827_v24  ;;  %854 = vmatpush3.bf16.msra.mxu1 %v851_v49 }
  0x22   :  { %856 = vmatprep.subr.bf16.mxu1 %v855_v52 }
  0x24   :  { %700 = vmatmul.mubr.f32.vlgmr.msra.gmra.mrb[0].mxu0 %v33_v25 }
  0x25   :  { %702 = vmatprep.mubr.f32.mxu0 %v34_v26  ;;  %858 = vmatpush3.bf16.msra.mxu1 %v855_v52  ;;  %v592_v52 = vld [vmem:[%s1183_s5] ss:$0 sm:$0xff] }
  0x26   :  { %860 = vmatprep.subr.bf16.mxu1 %v859_v55 }
  0x28   :  { %703 = vmatmul.mubr.f32.gmra.mrb[2].mxu0 %v35_v27 }
  0x29   :  { %705 = vmatprep.mubr.f32.mxu0 %v36_v28  ;;  %862 = vmatpush3.bf16.msra.mxu1 %v859_v55 }
  0x2c   :  { %706 = vmatmul.mubr.f32.gmra.mrb[4].mxu0 %v37_v29 }
  0x2d   :  { %708 = vmatprep.mubr.f32.mxu0 %v38_v30 }
  0x30   :  { %709 = vmatmul.mubr.f32.gmra.mrb[6].mxu0 %v39_v31 }
  0xf7   :  { %v701_v56 = vpop.f32.mrb[0].mxu0 }
  0xf8   :  { %v122_v57 = vpop.f32.mrb[1].mxu0 }
  0xf9   :  { %v163_v58 = vadd.f32 %v701_v56, %v122_v57 }
  0xfb   :  { %v704_v59 = vpop.f32.mrb[2].mxu0 }
  0xfc   :  { %v132_v60 = vpop.f32.mrb[3].mxu0 }
  0xfd   :  { %v164_v61 = vadd.f32 %v163_v58, %v132_v60 }
  0xff   :  { %v707_v62 = vpop.f32.mrb[4].mxu0  ;;  %v165_v63 = vadd.f32 %v704_v59, %v164_v61 }
 0x100   :  { %v142_v0 = vpop.f32.mrb[5].mxu0 }
 0x101   :  { %v166_v1 = vadd.f32 %v165_v63, %v142_v0 }
 0x103   :  { %v710_v2 = vpop.f32.mrb[6].mxu0  ;;  %v167_v3 = vadd.f32 %v707_v62, %v166_v1 }
 0x104   :  { %v152_v4 = vpop.f32.mrb[7].mxu0 }
 0x105   :  { %v168_v5 = vadd.f32 %v167_v3, %v152_v4 }
 0x107   :  { %v169_v6 = vadd.f32 %v710_v2, %v168_v5 }
 0x109   :  { %v170_v7 = vrot.slane %v169_v6, 4 }
 0x10b   :  { %v171_v8 = vadd.f32 %v170_v7, %v169_v6 }
 0x10d   :  { %v172_v9 = vrot.slane %v171_v8, 2 }
 0x10f   :  { %v173_v10 = vadd.f32 %v172_v9, %v171_v8 }
 0x111   :  { %v174_v11 = vrot.slane %v173_v10, 1 }
 0x113   :  { %v175_v12 = vadd.f32 %v174_v11, %v173_v10 }
 0x115   :  { %v176_v13 = vmul.f32 0.015625, %v175_v12 }
 0x117   :  { %v177_v14 = vsub.f32 %v122_v57, %v176_v13  ;;  %v178_v15 = vsub.f32 %v701_v56, %v176_v13  ;;  %v179_v16 = vsub.f32 %v132_v60, %v176_v13  ;;  %v180_v17 = vsub.f32 %v704_v59, %v176_v13 }
 0x118   :  { %v181_v18 = vsub.f32 %v142_v0, %v176_v13  ;;  %v182_v19 = vsub.f32 %v707_v62, %v176_v13  ;;  %v183_v20 = vsub.f32 %v152_v4, %v176_v13  ;;  %v184_v21 = vsub.f32 %v710_v2, %v176_v13  ;;  %v452_v13 = vld [vmem:[%s1184_s3] sm:$0xff] }
 0x119   :  { %v185_v22 = vmul.f32 %v177_v14, %v177_v14  ;;  %v186_v23 = vmul.f32 %v178_v15, %v178_v15  ;;  %v187_v24 = vmul.f32 %v179_v16, %v179_v16  ;;  %v188_v26 = vmul.f32 %v180_v17, %v180_v17 }
 0x11a   :  { %v189_v28 = vmul.f32 %v181_v18, %v181_v18  ;;  %v190_v30 = vmul.f32 %v182_v19, %v182_v19  ;;  %v191_v32 = vmul.f32 %v183_v20, %v183_v20  ;;  %v192_v34 = vmul.f32 %v184_v21, %v184_v21 }
 0x11b   :  { %v193_v25 = vadd.f32 %v186_v23, %v185_v22  ;;  %v458_v22 = vld [vmem:[%s1184_s3 + $0x30] sm:$0xff]  ;;  %v459_v23 = vld [vmem:[%s1184_s3 + $0x38] sm:$0xff] }
 0x11d   :  { %v194_v27 = vadd.f32 %v193_v25, %v187_v24  ;;  %v875_v24 = vpack.c.bf16 %v459_v23, %v458_v22  ;;  %v460_v25 = vld [vmem:[%s1184_s3 + $0x40] sm:$0xff] }
 0x11f   :  { %v195_v29 = vadd.f32 %v194_v27, %v188_v26  ;;  %v461_v26 = vld [vmem:[%s1184_s3 + $0x48] sm:$0xff] }
 0x120   :  { %v879_v27 = vpack.c.bf16 %v461_v26, %v460_v25 }
 0x121   :  { %v196_v31 = vadd.f32 %v195_v29, %v189_v28  ;;  %v462_v28 = vld [vmem:[%s1184_s3 + $0x50] sm:$0xff]  ;;  %v463_v29 = vld [vmem:[%s1184_s3 + $0x58] sm:$0xff] }
 0x123   :  { %v197_v33 = vadd.f32 %v196_v31, %v190_v30  ;;  %v883_v30 = vpack.c.bf16 %v463_v29, %v462_v28  ;;  %v464_v31 = vld [vmem:[%s1184_s3 + $0x60] sm:$0xff] }
 0x124   :  { %v367_v28 = vld [vmem:[%s1185_s6] sm:$0x1] }
 0x125   :  { %v198_v35 = vadd.f32 %v197_v33, %v191_v32  ;;  %v465_v32 = vld [vmem:[%s1184_s3 + $0x68] sm:$0xff] }
 0x126   :  { %v887_v33 = vpack.c.bf16 %v465_v32, %v464_v31  ;;  %v593_v32 = vld [vmem:[%s1186_s7] ss:$0 sm:$0xff] }
 0x127   :  { %v199_v36 = vadd.f32 %v198_v35, %v192_v34  ;;  %v466_v34 = vld [vmem:[%s1184_s3 + $0x70] sm:$0xff]  ;;  %v467_v35 = vld [vmem:[%s1184_s3 + $0x78] sm:$0xff] }
 0x129   :  { %v200_v37 = vrot.slane %v199_v36, 4 }
 0x12b   :  { %v201_v38 = vadd.f32 %v200_v37, %v199_v36  ;;  %v891_v36 = vpack.c.bf16 %v467_v35, %v466_v34 }
 0x12d   :  { %v202_v39 = vrot.slane %v201_v38, 2 }
 0x12f   :  { %v203_v40 = vadd.f32 %v202_v39, %v201_v38 }
 0x131   :  { %v204_v41 = vrot.slane %v203_v40, 1 }
 0x133   :  { %v205_v42 = vadd.f32 %v204_v41, %v203_v40 }
 0x135   :  { %v206_v43 = vmul.f32 0.015625, %v205_v42 }
 0x137   :  { %v207_v44 = vadd.f32 1e-05, %v206_v43 }
 0x139   :  { %911 = vrsqrt.f32 %v207_v44 }
 0x143   :  { %v912_v49 = vpop.eup %911 }
 0x144   :  { %v209_v50 = vmul.f32 %v912_v49, %v161_v47 }
 0x146   :  { %v214_v51 = vrot.slane %v209_v50, %v213_v48 }
 0x148   :  { %v222_v53 = vmul.f32 %v214_v51, %v183_v20  ;;  %v216_v54 = vmul.f32 %v214_v51, %v177_v14  ;;  %v217_v55 = vmul.f32 %v214_v51, %v178_v15  ;;  %v218_v56 = vmul.f32 %v214_v51, %v179_v16  ;;  %v453_v14 = vld [vmem:[%s1184_s3 + $0x8] sm:$0xff]  ;;  %v454_v16 = vld [vmem:[%s1184_s3 + $0x10] sm:$0xff] }
 0x149   :  { %v219_v57 = vmul.f32 %v214_v51, %v180_v17  ;;  %v220_v58 = vmul.f32 %v214_v51, %v181_v18  ;;  %v221_v59 = vmul.f32 %v214_v51, %v182_v19  ;;  %v223_v60 = vmul.f32 %v214_v51, %v184_v21  ;;  %v455_v17 = vld [vmem:[%s1184_s3 + $0x18] sm:$0xff]  ;;  %v456_v19 = vld [vmem:[%s1184_s3 + $0x20] sm:$0xff]  ;;  %v457_v20 = vld [vmem:[%s1184_s3 + $0x28] sm:$0xff] }
 0x14a   :  { %v230_v61 = vadd.f32 %v592_v52, %v216_v54  ;;  %v231_v62 = vadd.f32 %v592_v52, %v217_v55  ;;  %v232_v63 = vadd.f32 %v592_v52, %v218_v56  ;;  %v236_v8 = vadd.f32 %v592_v52, %v222_v53 }
 0x14b   :  { %v233_v2 = vadd.f32 %v592_v52, %v219_v57  ;;  %v234_v4 = vadd.f32 %v592_v52, %v220_v58  ;;  %v235_v6 = vadd.f32 %v592_v52, %v221_v59  ;;  %v237_v10 = vadd.f32 %v592_v52, %v223_v60 }
 0x14c   :  { %v238_v0 = vmax.f32 %v230_v61, 0.0  ;;  %v239_v1 = vmax.f32 %v231_v62, 0.0  ;;  %v240_v3 = vmax.f32 %v232_v63, 0.0  ;;  %v244_v11 = vmax.f32 %v236_v8, 0.0 }
 0x14d   :  { %v241_v5 = vmax.f32 %v233_v2, 0.0  ;;  %v242_v7 = vmax.f32 %v234_v4, 0.0  ;;  %v243_v9 = vmax.f32 %v235_v6, 0.0  ;;  %v245_v12 = vmax.f32 %v237_v10, 0.0 }
 0x14e   :  { %743 = vmatprep.mubr.f32.mxu1 %v238_v0  ;;  %v863_v15 = vpack.c.bf16 %v453_v14, %v452_v13  ;;  %v867_v18 = vpack.c.bf16 %v455_v17, %v454_v16  ;;  %v871_v21 = vpack.c.bf16 %v457_v20, %v456_v19 }
 0x14f   :  { %744 = vmatmul.mubr.f32.vlgmr.msra.gmra.mrb[0].mxu1 %v239_v1 }
 0x150   :  { %746 = vmatprep.mubr.f32.mxu1 %v240_v3  ;;  %864 = vmatprep.subr.bf16.mxu0 %v863_v15 }
 0x151   :  { %895 = vmatprep.subr.bf16.mxu1 %v863_v15  ;;  %866 = vmatpush3.bf16.msra.mxu0 %v863_v15 }
 0x152   :  { %903 = vmatpush3.bf16.msra.mxu1 %v863_v15  ;;  %868 = vmatprep.subr.bf16.mxu0 %v867_v18 }
 0x153   :  { %747 = vmatmul.mubr.f32.gmra.mrb[2].mxu1 %v241_v5  ;;  %896 = vmatprep.subr.bf16.mxu1 %v867_v18 }
 0x154   :  { %749 = vmatprep.mubr.f32.mxu1 %v242_v7 }
 0x155   :  { %870 = vmatpush3.bf16.msra.mxu0 %v867_v18 }
 0x156   :  { %904 = vmatpush3.bf16.msra.mxu1 %v867_v18  ;;  %872 = vmatprep.subr.bf16.mxu0 %v871_v21 }
 0x157   :  { %750 = vmatmul.mubr.f32.gmra.mrb[4].mxu1 %v243_v9  ;;  %897 = vmatprep.subr.bf16.mxu1 %v871_v21 }
 0x158   :  { %752 = vmatprep.mubr.f32.mxu1 %v244_v11 }
 0x159   :  { %874 = vmatpush3.bf16.msra.mxu0 %v871_v21 }
 0x15a   :  { %905 = vmatpush3.bf16.msra.mxu1 %v871_v21  ;;  %876 = vmatprep.subr.bf16.mxu0 %v875_v24 }
 0x15b   :  { %753 = vmatmul.mubr.f32.gmra.mrb[6].mxu1 %v245_v12  ;;  %898 = vmatprep.subr.bf16.mxu1 %v875_v24 }
 0x15d   :  { %878 = vmatpush3.bf16.msra.mxu0 %v875_v24 }
 0x15e   :  { %906 = vmatpush3.bf16.msra.mxu1 %v875_v24  ;;  %880 = vmatprep.subr.bf16.mxu0 %v879_v27 }
 0x15f   :  { %899 = vmatprep.subr.bf16.mxu1 %v879_v27 }
 0x161   :  { %882 = vmatpush3.bf16.msra.mxu0 %v879_v27 }
 0x162   :  { %907 = vmatpush3.bf16.msra.mxu1 %v879_v27  ;;  %884 = vmatprep.subr.bf16.mxu0 %v883_v30 }
 0x163   :  { %900 = vmatprep.subr.bf16.mxu1 %v883_v30 }
 0x165   :  { %886 = vmatpush3.bf16.msra.mxu0 %v883_v30 }
 0x166   :  { %908 = vmatpush3.bf16.msra.mxu1 %v883_v30  ;;  %888 = vmatprep.subr.bf16.mxu0 %v887_v33 }
 0x167   :  { %901 = vmatprep.subr.bf16.mxu1 %v887_v33 }
 0x169   :  { %890 = vmatpush3.bf16.msra.mxu0 %v887_v33 }
 0x16a   :  { %909 = vmatpush3.bf16.msra.mxu1 %v887_v33  ;;  %892 = vmatprep.subr.bf16.mxu0 %v891_v36 }
 0x16b   :  { %902 = vmatprep.subr.bf16.mxu1 %v891_v36 }
 0x16d   :  { %894 = vmatpush3.bf16.msra.mxu0 %v891_v36 }
 0x16e   :  { %910 = vmatpush3.bf16.msra.mxu1 %v891_v36 }
 0x222   :  { %v745_v37 = vpop.f32.mrb[0].mxu1 }
 0x223   :  { %v328_v38 = vpop.f32.mrb[1].mxu1 }
 0x224   :  { %v369_v39 = vadd.f32 %v745_v37, %v328_v38 }
 0x226   :  { %v748_v40 = vpop.f32.mrb[2].mxu1 }
 0x227   :  { %v338_v41 = vpop.f32.mrb[3].mxu1 }
 0x228   :  { %v370_v42 = vadd.f32 %v369_v39, %v338_v41 }
 0x22a   :  { %v751_v43 = vpop.f32.mrb[4].mxu1  ;;  %v371_v44 = vadd.f32 %v748_v40, %v370_v42 }
 0x22b   :  { %v348_v45 = vpop.f32.mrb[5].mxu1 }
 0x22c   :  { %v372_v47 = vadd.f32 %v371_v44, %v348_v45 }
 0x22e   :  { %v754_v49 = vpop.f32.mrb[6].mxu1  ;;  %v373_v50 = vadd.f32 %v751_v43, %v372_v47 }
 0x22f   :  { %v358_v51 = vpop.f32.mrb[7].mxu1 }
 0x230   :  { %v374_v52 = vadd.f32 %v373_v50, %v358_v51 }
 0x232   :  { %v375_v53 = vadd.f32 %v754_v49, %v374_v52 }
 0x234   :  { %v376_v54 = vrot.slane %v375_v53, 4 }
 0x236   :  { %v377_v55 = vadd.f32 %v376_v54, %v375_v53 }
 0x238   :  { %v378_v56 = vrot.slane %v377_v55, 2 }
 0x23a   :  { %v379_v57 = vadd.f32 %v378_v56, %v377_v55 }
 0x23c   :  { %v380_v58 = vrot.slane %v379_v57, 1 }
 0x23e   :  { %v381_v59 = vadd.f32 %v380_v58, %v379_v57  ;;  %v594_v57 = vld [vmem:[%s1187_s8] ss:$0 sm:$0xff] }
 0x240   :  { %v382_v60 = vmul.f32 0.015625, %v381_v59 }
 0x242   :  { %v383_v61 = vsub.f32 %v328_v38, %v382_v60  ;;  %v384_v62 = vsub.f32 %v745_v37, %v382_v60  ;;  %v385_v63 = vsub.f32 %v338_v41, %v382_v60  ;;  %v386_v0 = vsub.f32 %v748_v40, %v382_v60 }
 0x243   :  { %v387_v1 = vsub.f32 %v348_v45, %v382_v60  ;;  %v388_v2 = vsub.f32 %v751_v43, %v382_v60  ;;  %v389_v3 = vsub.f32 %v358_v51, %v382_v60  ;;  %v390_v4 = vsub.f32 %v754_v49, %v382_v60 }
 0x244   :  { %v391_v5 = vmul.f32 %v383_v61, %v383_v61  ;;  %v392_v6 = vmul.f32 %v384_v62, %v384_v62  ;;  %v393_v7 = vmul.f32 %v385_v63, %v385_v63  ;;  %v394_v9 = vmul.f32 %v386_v0, %v386_v0 }
 0x245   :  { %v395_v11 = vmul.f32 %v387_v1, %v387_v1  ;;  %v396_v13 = vmul.f32 %v388_v2, %v388_v2  ;;  %v397_v15 = vmul.f32 %v389_v3, %v389_v3  ;;  %v398_v17 = vmul.f32 %v390_v4, %v390_v4 }
 0x246   :  { %v399_v8 = vadd.f32 %v392_v6, %v391_v5 }
 0x248   :  { %v400_v10 = vadd.f32 %v399_v8, %v393_v7 }
 0x24a   :  { %v401_v12 = vadd.f32 %v400_v10, %v394_v9 }
 0x24c   :  { %v402_v14 = vadd.f32 %v401_v12, %v395_v11 }
 0x24e   :  { %v403_v16 = vadd.f32 %v402_v14, %v396_v13 }
 0x250   :  { %v404_v18 = vadd.f32 %v403_v16, %v397_v15 }
 0x252   :  { %v405_v19 = vadd.f32 %v404_v18, %v398_v17 }
 0x254   :  { %v406_v20 = vrot.slane %v405_v19, 4 }
 0x256   :  { %v407_v21 = vadd.f32 %v406_v20, %v405_v19 }
 0x258   :  { %v408_v22 = vrot.slane %v407_v21, 2 }
 0x25a   :  { %v409_v23 = vadd.f32 %v408_v22, %v407_v21 }
 0x25c   :  { %v410_v24 = vrot.slane %v409_v23, 1 }
 0x25e   :  { %v411_v25 = vadd.f32 %v410_v24, %v409_v23 }
 0x260   :  { %v412_v26 = vmul.f32 0.015625, %v411_v25 }
 0x262   :  { %v413_v27 = vadd.f32 1e-05, %v412_v26 }
 0x264   :  { %913 = vrsqrt.f32 %v413_v27 }
 0x26e   :  { %v914_v29 = vpop.eup %913 }
 0x26f   :  { %v415_v30 = vmul.f32 %v914_v29, %v367_v28 }
 0x271   :  { %v420_v31 = vrot.slane %v415_v30, %v213_v48 }
 0x273   :  { %v427_v33 = vmul.f32 %v420_v31, %v388_v2  ;;  %v428_v34 = vmul.f32 %v420_v31, %v389_v3  ;;  %v422_v35 = vmul.f32 %v420_v31, %v383_v61  ;;  %v426_v36 = vmul.f32 %v420_v31, %v387_v1 }
 0x274   :  { %v423_v37 = vmul.f32 %v420_v31, %v384_v62  ;;  %v424_v38 = vmul.f32 %v420_v31, %v385_v63  ;;  %v425_v39 = vmul.f32 %v420_v31, %v386_v0  ;;  %v429_v40 = vmul.f32 %v420_v31, %v390_v4 }
 0x275   :  { %v436_v41 = vadd.f32 %v593_v32, %v422_v35  ;;  %v440_v42 = vadd.f32 %v593_v32, %v426_v36  ;;  %v441_v43 = vadd.f32 %v593_v32, %v427_v33  ;;  %v442_v44 = vadd.f32 %v593_v32, %v428_v34 }
 0x276   :  { %v437_v45 = vadd.f32 %v593_v32, %v423_v37  ;;  %v438_v47 = vadd.f32 %v593_v32, %v424_v38  ;;  %v439_v51 = vadd.f32 %v593_v32, %v425_v39  ;;  %v443_v52 = vadd.f32 %v593_v32, %v429_v40 }
 0x277   :  { %v444_v46 = vmax.f32 %v436_v41, 0.0  ;;  %v448_v48 = vmax.f32 %v440_v42, 0.0  ;;  %v449_v49 = vmax.f32 %v441_v43, 0.0  ;;  %v450_v54 = vmax.f32 %v442_v44, 0.0 }
 0x278   :  { %v445_v50 = vmax.f32 %v437_v45, 0.0  ;;  %v446_v53 = vmax.f32 %v438_v47, 0.0  ;;  %v447_v55 = vmax.f32 %v439_v51, 0.0  ;;  %v451_v56 = vmax.f32 %v443_v52, 0.0 }
 0x279   :  { %787 = vmatprep.mubr.f32.mxu0 %v444_v46  ;;  %793 = vmatprep.mubr.f32.mxu1 %v448_v48 }
 0x27a   :  { %788 = vmatmul.mubr.f32.vlgmr.msra.gmra.mrb[8].mxu0 %v445_v50  ;;  %794 = vmatmul.mubr.f32.vlgmr.msra.gmra.mrb[8].mxu1 %v449_v49 }
 0x27b   :  { %790 = vmatprep.mubr.f32.mxu0 %v446_v53  ;;  %796 = vmatprep.mubr.f32.mxu1 %v450_v54 }
 0x27e   :  { %791 = vmatmul.mubr.f32.gmra.mrb[10].mxu0 %v447_v55  ;;  %797 = vmatmul.mubr.f32.gmra.mrb[10].mxu1 %v451_v56 }
 0x34d   :  { %v789_v58 = vpop.f32.mrb[8].mxu0  ;;  %v795_v59 = vpop.f32.mrb[8].mxu1 }
 0x34e   :  { %v547_v60 = vadd.f32 %v789_v58, %v594_v57  ;;  %v567_v61 = vadd.f32 %v795_v59, %v594_v57  ;;  %v541_v62 = vpop.f32.mrb[9].mxu0  ;;  %v561_v63 = vpop.f32.mrb[9].mxu1 }
 0x34f   :  { %v542_v0 = vadd.f32 %v594_v57, %v541_v62  ;;  %v562_v1 = vadd.f32 %v594_v57, %v561_v63 }
 0x350   :  { %581 = vst [vmem:[%s1188_s9 + $0x8] sm:$0xff] %v547_v60  ;;  %585 = vst [vmem:[%s1188_s9 + $0x28] sm:$0xff] %v567_v61 }
 0x351   :  { %580 = vst [vmem:[%s1188_s9] sm:$0xff] %v542_v0  ;;  %584 = vst [vmem:[%s1188_s9 + $0x20] sm:$0xff] %v562_v1  ;;  %v792_v2 = vpop.f32.mrb[10].mxu0  ;;  %v798_v3 = vpop.f32.mrb[10].mxu1 }
 0x352   :  { %v557_v4 = vadd.f32 %v792_v2, %v594_v57  ;;  %v577_v5 = vadd.f32 %v798_v3, %v594_v57  ;;  %v551_v6 = vpop.f32.mrb[11].mxu0  ;;  %v571_v7 = vpop.f32.mrb[11].mxu1 }
 0x353   :  { %v552_v8 = vadd.f32 %v594_v57, %v551_v6  ;;  %v572_v9 = vadd.f32 %v594_v57, %v571_v7 }
 0x354   :  { %583 = vst [vmem:[%s1188_s9 + $0x18] sm:$0xff] %v557_v4  ;;  %587 = vst [vmem:[%s1188_s9 + $0x38] sm:$0xff] %v577_v5 }
 0x355   :  { %582 = vst [vmem:[%s1188_s9 + $0x10] sm:$0xff] %v552_v8  ;;  %586 = vst [vmem:[%s1188_s9 + $0x30] sm:$0xff] %v572_v9 }

</bundles_post_ra>
